<compile_context>
chip_gen: v7x
topology: tpu7x:2x2x1
jax: 0.10.0
libtpu: 0.0.40
codegen_flags: <defaults>
</compile_context>

<pallas_src>
from functools import partial

import jax
import jax.numpy as jnp
from jax.experimental import pallas as pl
from jax.experimental.pallas import tpu as pltpu


def self_attention_kernel(x_ref, w1_ref, b1_ref, w2t_ref, out_ref, *, bt, seq):
    # x_ref   : (bt*seq, H)  rows of the current batch tile, sequence-major
    # w1_ref  : (H, 512)     first projection weight (in-features x out-features)
    # b1_ref  : (1, 512)
    # w2t_ref : (1, 512)     second projection weight, stored as a row vector
    # out_ref : (bt, H)
    x = x_ref[...]                                                # (bt*seq, H) f32
    H = x.shape[-1]

    # ---- Linear(H, 512) + ReLU over ALL bt*seq rows at once (dense MXU M dim). ----
    h = jnp.dot(x, w1_ref[...], preferred_element_type=jnp.float32) + b1_ref[...]
    h = jnp.maximum(h, 0.0)                                       # (bt*seq, 512)

    # ---- Linear(512, 1) as VPU multiply + chunked reduction: pre-reduce the
    # 128-lane chunks with VPU adds, then a single 128->1 cross-lane (XLU) reduce.
    # b2 omitted: softmax is shift-invariant, so it has no effect on the output.
    hw = h * w2t_ref[...]                                         # (bt*seq, 512)
    D = hw.shape[-1]
    if D % 128 == 0 and D > 128:
        acc = hw[:, :128]
        for c in range(1, D // 128):
            acc = acc + hw[:, c * 128:(c + 1) * 128]              # VPU adds
    else:
        acc = hw
    scores = jnp.sum(acc, axis=-1, keepdims=True)                 # (bt*seq, 1)

    # ---- Batched softmax over the sequence + weighted sum (no per-batch unroll).
    # (bt*seq, .) -> (bt, seq, .) is a free relayout when seq % 8 == 0, so every
    # op below is a single batched VPU/EUP/XLU op across all bt batch elements.
    s = scores.reshape(bt, seq, 1)                                # (bt, seq, 1)
    m = jnp.max(s, axis=1, keepdims=True)                         # (bt, 1, 1)
    e = jnp.exp(s - m)                                            # (bt, seq, 1)  one EUP pass
    d = jnp.sum(e, axis=1, keepdims=True)                         # (bt, 1, 1)
    r = pl.reciprocal(d, approx=True)                             # EUP approx reciprocal
    r = r * (2.0 - d * r)                                         # one Newton step -> ~f32 accuracy
    w = e * r                                                     # (bt, seq, 1) softmax weights

    x3 = x.reshape(bt, seq, H)                                    # (bt, seq, H) free relayout
    out = jnp.sum(x3 * w, axis=1)                                 # (bt, H) batched sublane reduce
    out_ref[...] = out.astype(out_ref.dtype)                      # one dense (bt, H) store


def _batch_tile(batch, seq):
    """Pick the batch tile (a divisor of `batch`).

    * Tiles other than the full batch must be multiples of 8 so the (bt, H)
      output block is sublane-aligned.
    * Target M = bt*seq up to 256 rows: fills the MXU M dimension without
      blowing up the (M, 512) f32 intermediate (v5e keeps smaller M naturally).
    * For batch >= 16, keep at least 2 grid steps so the "parallel" grid axis
      can shard across both v7x TensorCores.
    """
    max_rows = 256
    cands = [d for d in range(1, batch + 1)
             if batch % d == 0 and (d % 8 == 0 or d == batch)]
    fitting = [d for d in cands if d * seq <= max_rows]
    bt = max(fitting) if fitting else min(cands)
    if bt == batch and batch >= 16:
        smaller = [d for d in fitting if d < batch] or [d for d in cands if d < batch]
        if smaller:
            bt = max(smaller)
    return bt


def self_attention(x, w1, b1, w2, b2=None):
    """Pallas forward of SelfAttention.

    `b2` is accepted for parity with the PyTorch module but unused: softmax is
    invariant to adding a constant to all scores, so it cannot change the output.
    """
    del b2
    B, N, H = x.shape
    D = w1.shape[1]
    bt = _batch_tile(B, N)
    assert B % bt == 0, (B, bt)
    M = bt * N

    x2d = x.reshape(B * N, H)   # free XLA reshape outside the kernel (batch-major rows)
    w2t = w2.reshape(1, D)      # (D, 1) -> (1, D) row vector for the VPU mul+reduce

    # VMEM budget (double-buffered x/out blocks + resident weights + (M, D)
    # intermediates).  Only raise the scoped limit when actually needed; cap at
    # v7x's 64 MiB physical VMEM.  For the test shapes this stays None.
    est_vmem = 4 * (2 * M * H + 2 * H * D + 4 * D + 2 * bt * H + 2 * M * D)
    vmem_limit = min(2 * est_vmem, 64 << 20) if est_vmem > (24 << 20) else None

    kernel = partial(self_attention_kernel, bt=bt, seq=N)
    return pl.pallas_call(
        kernel,
        out_shape=jax.ShapeDtypeStruct((B, H), x.dtype),
        grid=(B // bt,),
        in_specs=[
            pl.BlockSpec((M, H), lambda i: (i, 0)),
            # Constant index maps keep the weights DMA'd once / VMEM-resident.
            pl.BlockSpec((H, D), lambda i: (0, 0)),
            pl.BlockSpec((1, D), lambda i: (0, 0)),
            pl.BlockSpec((1, D), lambda i: (0, 0)),
        ],
        out_specs=pl.BlockSpec((bt, H), lambda i: (i, 0)),
        compiler_params=pltpu.CompilerParams(
            dimension_semantics=("parallel",),
            vmem_limit_bytes=vmem_limit,
        ),
    )(x2d, w1, b1, w2t)


def reference(x, w1, b1, w2, b2):
    # plain-JAX mirror of the PyTorch forward (b2 applied, exact divide) for verification
    a = jnp.maximum(x @ w1 + b1, 0.0) @ w2 + b2        # (B, N, 1)
    w = jax.nn.softmax(a[..., 0], axis=1)              # (B, N)
    return jnp.sum(x * w[..., None], axis=1)           # (B, H)


if __name__ == "__main__":
    B, N, H, D = 2, 8, 32, 512

    key = jax.random.PRNGKey(0)
    kx, kw1, kb1, kw2, kb2 = jax.random.split(key, 5)

    # input
    x = jax.random.normal(kx, (B, N, H), dtype=jnp.float32)

    # deterministic PyTorch-Linear-style init: U(-1/sqrt(fan_in), 1/sqrt(fan_in))
    lim1 = 1.0 / jnp.sqrt(jnp.float32(H))
    w1 = jax.random.uniform(kw1, (H, D), minval=-lim1, maxval=lim1, dtype=jnp.float32)
    b1 = jax.random.uniform(kb1, (1, D), minval=-lim1, maxval=lim1, dtype=jnp.float32)
    lim2 = 1.0 / jnp.sqrt(jnp.float32(D))
    w2 = jax.random.uniform(kw2, (D, 1), minval=-lim2, maxval=lim2, dtype=jnp.float32)
    b2 = jax.random.uniform(kb2, (1, 1), minval=-lim2, maxval=lim2, dtype=jnp.float32)

    out = self_attention(x, w1, b1, w2, b2)
    out = jax.block_until_ready(out)

    ref = reference(x, w1, b1, w2, b2)
    assert out.shape == (B, H), out.shape
    # rtol slightly relaxed to cover the approx-reciprocal(+Newton) normalization
    # and the chunked score reduction order.
    assert jnp.allclose(out, ref, atol=1e-5, rtol=1e-4), "mismatch vs reference"

    print("KERNEL_OK")
</pallas_src>

<mosaic_0001>
module attributes {stable_mosaic.version = 11 : i64} {
  func.func @self_attention_kernel(%arg0: i32, %arg1: memref<16x32xf32, #tpu.memory_space<vmem>>, %arg2: memref<32x512xf32, #tpu.memory_space<vmem>>, %arg3: memref<1x512xf32, #tpu.memory_space<vmem>>, %arg4: memref<1x512xf32, #tpu.memory_space<vmem>>, %arg5: memref<2x32xf32, #tpu.memory_space<vmem>>) attributes {dimension_semantics = [#tpu.dimension_semantics<parallel>], iteration_bounds = array<i64: 1>, scalar_prefetch = 0 : i64, scratch_operands = 0 : i64, tpu.core_type = #tpu.core_type<tc>, window_params = [{transform_indices = @transform_0, window_bounds = array<i64: 16, 32>}, {pipeline_mode = #tpu.pipeline_mode<synchronous>, transform_indices = @transform_1, window_bounds = array<i64: 32, 512>}, {pipeline_mode = #tpu.pipeline_mode<synchronous>, transform_indices = @transform_2, window_bounds = array<i64: 1, 512>}, {pipeline_mode = #tpu.pipeline_mode<synchronous>, transform_indices = @transform_3, window_bounds = array<i64: 1, 512>}, {transform_indices = @transform_4, window_bounds = array<i64: 2, 32>}]} {
    %c0 = arith.constant 0 : index
    %c0_0 = arith.constant 0 : index
    %0 = vector.load %arg1[%c0, %c0_0] : memref<16x32xf32, #tpu.memory_space<vmem>>, vector<16x32xf32>
    %c0_1 = arith.constant 0 : index
    %c0_2 = arith.constant 0 : index
    %1 = vector.load %arg2[%c0_1, %c0_2] : memref<32x512xf32, #tpu.memory_space<vmem>>, vector<32x512xf32>
    %cst = arith.constant dense<0.000000e+00> : vector<16x512xf32>
    %2 = tpu.matmul %0, %1, %cst {dimension_numbers = #tpu.dot_dimension_numbers<[1], [0], [0], [1], [0, 0, 1, 1], [], []>} : vector<16x32xf32>, vector<32x512xf32>, vector<16x512xf32> -> vector<16x512xf32>
    %c0_3 = arith.constant 0 : index
    %c0_4 = arith.constant 0 : index
    %3 = vector.load %arg3[%c0_3, %c0_4] : memref<1x512xf32, #tpu.memory_space<vmem>>, vector<1x512xf32>
    %4 = vector.broadcast %3 : vector<1x512xf32> to vector<16x512xf32>
    %5 = arith.addf %2, %4 : vector<16x512xf32>
    %cst_5 = arith.constant 0.000000e+00 : f32
    %6 = vector.broadcast %cst_5 : f32 to vector<16x512xf32>
    %7 = arith.maximumf %5, %6 : vector<16x512xf32>
    %c0_6 = arith.constant 0 : index
    %c0_7 = arith.constant 0 : index
    %8 = vector.load %arg4[%c0_6, %c0_7] : memref<1x512xf32, #tpu.memory_space<vmem>>, vector<1x512xf32>
    %9 = vector.broadcast %8 : vector<1x512xf32> to vector<16x512xf32>
    %10 = arith.mulf %7, %9 : vector<16x512xf32>
    %11 = vector.extract_strided_slice %10 {offsets = [0, 0], sizes = [16, 128], strides = [1, 1]} : vector<16x512xf32> to vector<16x128xf32>
    %12 = vector.extract_strided_slice %10 {offsets = [0, 128], sizes = [16, 128], strides = [1, 1]} : vector<16x512xf32> to vector<16x128xf32>
    %13 = arith.addf %11, %12 : vector<16x128xf32>
    %14 = vector.extract_strided_slice %10 {offsets = [0, 256], sizes = [16, 128], strides = [1, 1]} : vector<16x512xf32> to vector<16x128xf32>
    %15 = arith.addf %13, %14 : vector<16x128xf32>
    %16 = vector.extract_strided_slice %10 {offsets = [0, 384], sizes = [16, 128], strides = [1, 1]} : vector<16x512xf32> to vector<16x128xf32>
    %17 = arith.addf %15, %16 : vector<16x128xf32>
    %cst_8 = arith.constant dense<0.000000e+00> : vector<16xf32>
    %18 = vector.multi_reduction <add>, %17, %cst_8 [1] : vector<16x128xf32> to vector<16xf32>
    %19 = vector.shape_cast %18 : vector<16xf32> to vector<16x1xf32>
    %20 = vector.shape_cast %19 : vector<16x1xf32> to vector<2x8x1xf32>
    %cst_9 = arith.constant dense<0xFF800000> : vector<2x1xf32>
    %21 = vector.multi_reduction <maximumf>, %20, %cst_9 [1] : vector<2x8x1xf32> to vector<2x1xf32>
    %22 = vector.shape_cast %21 : vector<2x1xf32> to vector<2x1x1xf32>
    %23 = vector.broadcast %22 : vector<2x1x1xf32> to vector<2x8x1xf32>
    %24 = arith.subf %20, %23 : vector<2x8x1xf32>
    %25 = math.exp %24 : vector<2x8x1xf32>
    %cst_10 = arith.constant dense<0.000000e+00> : vector<2x1xf32>
    %26 = vector.multi_reduction <add>, %25, %cst_10 [1] : vector<2x8x1xf32> to vector<2x1xf32>
    %27 = vector.shape_cast %26 : vector<2x1xf32> to vector<2x1x1xf32>
    %28 = tpu.reciprocal %27 {approx = true} : vector<2x1x1xf32> -> vector<2x1x1xf32>
    %29 = arith.mulf %27, %28 : vector<2x1x1xf32>
    %cst_11 = arith.constant 2.000000e+00 : f32
    %30 = vector.broadcast %cst_11 : f32 to vector<2x1x1xf32>
    %31 = arith.subf %30, %29 : vector<2x1x1xf32>
    %32 = arith.mulf %28, %31 : vector<2x1x1xf32>
    %33 = vector.broadcast %32 : vector<2x1x1xf32> to vector<2x8x1xf32>
    %34 = arith.mulf %25, %33 : vector<2x8x1xf32>
    %35 = vector.shape_cast %0 : vector<16x32xf32> to vector<2x8x32xf32>
    %36 = vector.broadcast %34 : vector<2x8x1xf32> to vector<2x8x32xf32>
    %37 = arith.mulf %35, %36 : vector<2x8x32xf32>
    %cst_12 = arith.constant dense<0.000000e+00> : vector<2x32xf32>
    %38 = vector.multi_reduction <add>, %37, %cst_12 [1] : vector<2x8x32xf32> to vector<2x32xf32>
    %c0_13 = arith.constant 0 : index
    %c0_14 = arith.constant 0 : index
    %39 = vector.load %arg5[%c0_13, %c0_14] : memref<2x32xf32, #tpu.memory_space<vmem>>, vector<2x32xf32>
    tpu.vector_store %arg5[%c0_13, %c0_14], %38 {strides = array<i32>} : memref<2x32xf32, #tpu.memory_space<vmem>>, vector<2x32xf32>,
    return
  }
  func.func @transform_0(%arg0: i32) -> (i32, i32) {
    %c0_i32 = arith.constant 0 : i32
    %c0_i32_0 = arith.constant 0 : i32
    return %arg0, %c0_i32 : i32, i32
  }
  func.func @transform_1(%arg0: i32) -> (i32, i32) {
    %c0_i32 = arith.constant 0 : i32
    %c0_i32_0 = arith.constant 0 : i32
    %c0_i32_1 = arith.constant 0 : i32
    return %c0_i32, %c0_i32_0 : i32, i32
  }
  func.func @transform_2(%arg0: i32) -> (i32, i32) {
    %c0_i32 = arith.constant 0 : i32
    %c0_i32_0 = arith.constant 0 : i32
    %c0_i32_1 = arith.constant 0 : i32
    return %c0_i32, %c0_i32_0 : i32, i32
  }
  func.func @transform_3(%arg0: i32) -> (i32, i32) {
    %c0_i32 = arith.constant 0 : i32
    %c0_i32_0 = arith.constant 0 : i32
    %c0_i32_1 = arith.constant 0 : i32
    return %c0_i32, %c0_i32_0 : i32, i32
  }
  func.func @transform_4(%arg0: i32) -> (i32, i32) {
    %c0_i32 = arith.constant 0 : i32
    %c0_i32_0 = arith.constant 0 : i32
    return %arg0, %c0_i32 : i32, i32
  }
}

</mosaic_0001>

<bundles_post_ra>
// kernel: tpu_custom_call.1
= control target key start
LH: loop header
LB: loop body
LE: loop exit
PB: predicated region body
PF: predicated region fallthrough
CT: control target
= control target key end

     0   :  { %9 = vsyncpa [#allocation3], 0  ;;  %s573_s0 = inlined_call_operand.hbm [shape: f32[16,32], index: 0, kind: input, shape index: {}]   ;;  %s574_s1 = inlined_call_operand.hbm [shape: f32[32,512], index: 1, kind: input, shape index: {}]   ;;  %s575_s2 = inlined_call_operand.vmem [shape: f32[1,512], index: 2, kind: input, shape index: {}]   ;;  %s576_s3 = inlined_call_operand.vmem [shape: f32[1,512], index: 3, kind: input, shape index: {}]   ;;  %s577_s4 = inlined_call_operand.hbm [shape: f32[2,32], index: 4, kind: output, shape index: {}]  }
   0x1   :  { %10 = vsyncpa [#allocation6], 0 }
   0x2   :  { %11 = vsyncpa [#allocation4], 0  ;;  %s482_s15 = smov [#allocation2]   ;;  %s410_s19 = scalar_lea.hbm %s573_s0, 256 }
   0x3   :  { %s17_s16 = sshll.u32 %s482_s15, 4  ;;  %p411_p0 = scmp.ne.s32.totalorder %s573_s0, %s410_s19  ;;  %s18_s16 = int_to_ptr.vmem [resolvable:$true] %s17_s16 }
   0x4   :  { %p414_p1 = scmp.lt.u32.totalorder %s410_s19, %s573_s0 }
   0x6   :  { %p416_p2 = pnand %p414_p1, %p411_p0 }
   0x8   :  { %419 = shalt.err (!%p416_p2)
}
   0x9   :  { %s420_s24 = scalar_lea.vmem %s18_s16, 256  ;;  %p425_p4 = scmp.lt.s32.totalorder %s18_s16, %s18_s16 }
   0xa   :  { %p421_p3 = scmp.ne.s32.totalorder %s18_s16, %s420_s24  ;;  %p426_p5 = scmp.lt.s32.totalorder %s420_s24, %s420_s24 }
   0xc   :  { %p427_p6 = por %p426_p5, %p425_p4 }
   0xe   :  { %p428_p7 = pnand %p427_p6, %p421_p3 }
  0x10   :  { %431 = shalt.err (!%p428_p7)
}
  0x11   :  { %s483_s25 = smov 128   ;;  %s484_s26 = smov 8  }
  0x12   :  { %23 = dma.hbm_to_vmem [thread:$0]  %s573_s0, 256, %s18_s16, [#allocation3], %s483_s25, %s483_s25, %s484_s26  }
  0x13   :  { %s485_s29 = smov [#allocation5]   ;;  %s432_s7 = scalar_lea.hbm %s574_s1, 2048 }
  0x14   :  { %s29_s30 = sshll.u32 %s485_s29, 4  ;;  %p433_p8 = scmp.ne.s32.totalorder %s574_s1, %s432_s7  ;;  %s30_s30 = int_to_ptr.vmem [resolvable:$true] %s29_s30 }
  0x15   :  { %p436_p9 = scmp.lt.u32.totalorder %s432_s7, %s574_s1 }
  0x17   :  { %p438_p10 = pnand %p436_p9, %p433_p8 }
  0x19   :  { %441 = shalt.err (!%p438_p10)
}
  0x1a   :  { %s442_s12 = scalar_lea.vmem %s30_s30, 2048  ;;  %p447_p12 = scmp.lt.s32.totalorder %s30_s30, %s30_s30 }
  0x1b   :  { %p443_p11 = scmp.ne.s32.totalorder %s30_s30, %s442_s12  ;;  %p448_p13 = scmp.lt.s32.totalorder %s442_s12, %s442_s12 }
  0x1d   :  { %p449_p0 = por %p448_p13, %p447_p12 }
  0x1f   :  { %p450_p1 = pnand %p449_p0, %p443_p11 }
  0x21   :  { %453 = shalt.err (!%p450_p1)
}
  0x22   :  { %s486_s0 = smov 512   ;;  %s487_s13 = smov 32  }
  0x23   :  { %35 = dma.hbm_to_vmem [thread:$0]  %s574_s1, 2048, %s30_s30, [#allocation6], %s486_s0, %s486_s0, %s487_s13  }
  0x24   :  { %476 = dma.done.wait [#allocation3], 256  }
  0x25   :  { %477 = vsyncadd [#allocation3], 4294967040 }
  0x26   :  { %478 = dma.done.wait [#allocation6], 2048  }
  0x27   :  { %479 = vsyncadd [#allocation6], 4294965248  ;;  %v488_v0 = vmov 0.0   ;;  %v49_v1 = vld [vmem:[#allocation5 + $0x8] sm:$0xff]  ;;  %v48_v3 = vld [vmem:[#allocation5] sm:$0xff]  ;;  %vm86_vm0 = vcmask 261120   ;;  %v66_v27 = vlaneseq }
  0x28   :  { %157 = vmatprep.mubr.f32.mxu0 %v488_v0  ;;  %234 = vmatprep.mubr.f32.mxu1 %v488_v0  ;;  %v53_v2 = vld [vmem:[#allocation5 + $0x28] sm:$0xff]  ;;  %v52_v5 = vld [vmem:[#allocation5 + $0x20] sm:$0xff]  ;;  %v51_v6 = vld [vmem:[#allocation5 + $0x18] sm:$0xff]  ;;  %vm353_vm1 = vcmask 1041409   ;;  %vm356_vm2 = vcmask 254976  }
  0x29   :  { %v378_v4 = vpack.c.bf16 %v53_v2, %v49_v1  ;;  %v55_v7 = vld [vmem:[#allocation5 + $0x38] sm:$0xff]  ;;  %v380_v8 = vpack.c.bf16 %v52_v5, %v48_v3  ;;  %v50_v10 = vld [vmem:[#allocation5 + $0x10] sm:$0xff]  ;;  %v57_v12 = vld [vmem:[#allocation5 + $0x48] sm:$0xff]  ;;  %v67_v28 = vshrl.u32 %v66_v27, 7 }
  0x2a   :  { %v386_v9 = vpack.c.bf16 %v55_v7, %v51_v6  ;;  %v54_v11 = vld [vmem:[#allocation5 + $0x30] sm:$0xff]  ;;  %v61_v14 = vld [vmem:[#allocation5 + $0x68] sm:$0xff]  ;;  %v56_v15 = vld [vmem:[#allocation5 + $0x40] sm:$0xff] }
  0x2b   :  { %379 = vmatprep.subr.bf16.mxu0 %v378_v4  ;;  %v388_v13 = vpack.c.bf16 %v54_v11, %v50_v10  ;;  %v60_v16 = vld [vmem:[#allocation5 + $0x60] sm:$0xff]  ;;  %v382_v17 = vpack.c.bf16 %v61_v14, %v57_v12  ;;  %v59_v19 = vld [vmem:[#allocation5 + $0x58] sm:$0xff]  ;;  %v58_v21 = vld [vmem:[#allocation5 + $0x50] sm:$0xff]  ;;  %v68_v29 = vsub.s32 0, %v67_v28  ;;  %v72_v31 = vsub.s32 1, %v67_v28 }
  0x2c   :  { %381 = vmatpush1.bf16.msra.mxu0 %v380_v8  ;;  %387 = vmatprep.subr.bf16.mxu1 %v386_v9  ;;  %v384_v18 = vpack.c.bf16 %v60_v16, %v56_v15  ;;  %v63_v20 = vld [vmem:[#allocation5 + $0x78] sm:$0xff]  ;;  %v62_v23 = vld [vmem:[#allocation5 + $0x70] sm:$0xff]  ;;  %v76_v32 = vsub.s32 2, %v67_v28  ;;  %v80_v33 = vsub.s32 3, %v67_v28 }
  0x2d   :  { %389 = vmatpush1.bf16.msra.mxu1 %v388_v13  ;;  %v390_v22 = vpack.c.bf16 %v63_v20, %v59_v19  ;;  %383 = vmatprep.subr.bf16.mxu0 %v382_v17  ;;  %v392_v24 = vpack.c.bf16 %v62_v23, %v58_v21  ;;  %v539_v25 = vld [vmem:[#allocation2] sm:$0xff]  ;;  %v545_v26 = vld [vmem:[#allocation2 + $0x8] sm:$0xff] }
  0x2e   :  { %v64_v30 = vld [vmem:[%s575_s2] sm:$0xf]  ;;  %s489_s2 = smov [#allocation7]  }
  0x2f   :  { %391 = vmatprep.subr.bf16.mxu1 %v390_v22  ;;  %v69_v34 = vrot.slane %v64_v30, %v68_v29  ;;  %v255_v35 = vld [vmem:[%s576_s3] sm:$0xf]  ;;  %v73_v36 = vrot.slane %v64_v30, %v72_v31  ;;  %v77_v37 = vrot.slane %v64_v30, %v76_v32  ;;  %v81_v38 = vrot.slane %v64_v30, %v80_v33  ;;  %s364_s3 = sshll.u32 %s489_s2, 4  ;;  %s365_s3 = int_to_ptr.vmem [resolvable:$true] %s364_s3 }
  0x30   :  { %385 = vmatpush1.bf16.msra.mxu0 %v384_v18  ;;  %v260_v41 = vrot.slane %v255_v35, %v68_v29  ;;  %v264_v45 = vrot.slane %v255_v35, %v72_v31  ;;  %v268_v47 = vrot.slane %v255_v35, %v76_v32  ;;  %v272_v59 = vrot.slane %v255_v35, %v80_v33  ;;  %s454_s19 = scalar_lea.vmem %s365_s3, 32  ;;  %p459_p3 = scmp.lt.s32.totalorder %s365_s3, %s365_s3 }
  0x31   :  { %393 = vmatpush1.bf16.msra.mxu1 %v392_v24  ;;  %p455_p2 = scmp.ne.s32.totalorder %s365_s3, %s454_s19  ;;  %p460_p4 = scmp.lt.s32.totalorder %s454_s19, %s454_s19 }
  0x33   :  { %374 = vmatmul.mubr.msk.f32.vlgmr.msra.gmra.mrb[0].mxu0 %vm86_vm0, %v539_v25  ;;  %p461_p5 = por %p460_p4, %p459_p3 }
  0x34   :  { %376 = vmatmul.mubr.msk.f32.vlgmr.msra.gmra.mrb[0].mxu1 %vm86_vm0, %v539_v25  ;;  %163 = vmatprep.mubr.f32.mxu0 %v488_v0 }
  0x35   :  { %240 = vmatprep.mubr.f32.mxu1 %v488_v0  ;;  %p462_p6 = pnand %p461_p5, %p455_p2 }
  0x37   :  { %375 = vmatmul.mubr.msk.f32.gmra.mrb[2].mxu0 %vm86_vm0, %v545_v26 }
  0x38   :  { %377 = vmatmul.mubr.msk.f32.gmra.mrb[2].mxu1 %vm86_vm0, %v545_v26 }
 0x106   :  { %v159_v39 = vpop.f32.mrb[0].mxu0 }
 0x107   :  { %v160_v40 = vadd.f32 %v159_v39, %v69_v34  ;;  %v161_v42 = vpop.f32.mrb[1].mxu0  ;;  %v236_v43 = vpop.f32.mrb[0].mxu1 }
 0x108   :  { %v162_v44 = vadd.f32 %v161_v42, %v73_v36  ;;  %v237_v46 = vadd.f32 %v236_v43, %v77_v37  ;;  %v238_v48 = vpop.f32.mrb[1].mxu1 }
 0x109   :  { %v247_v49 = vmax.f32 %v160_v40, 0.0  ;;  %v239_v50 = vadd.f32 %v238_v48, %v81_v38 }
 0x10a   :  { %v248_v51 = vmax.f32 %v162_v44, 0.0  ;;  %v249_v52 = vmax.f32 %v237_v46, 0.0  ;;  %v165_v53 = vpop.f32.mrb[2].mxu0 }
 0x10b   :  { %v277_v54 = vmul.f32 %v260_v41, %v247_v49  ;;  %v250_v55 = vmax.f32 %v239_v50, 0.0  ;;  %v166_v56 = vadd.f32 %v165_v53, %v69_v34  ;;  %v167_v57 = vpop.f32.mrb[3].mxu0  ;;  %v242_v58 = vpop.f32.mrb[2].mxu1 }
 0x10c   :  { %v278_v60 = vmul.f32 %v264_v45, %v248_v51  ;;  %v279_v61 = vmul.f32 %v268_v47, %v249_v52  ;;  %v168_v62 = vadd.f32 %v167_v57, %v73_v36  ;;  %v243_v63 = vadd.f32 %v242_v58, %v77_v37  ;;  %v244_v0 = vpop.f32.mrb[3].mxu1 }
 0x10d   :  { %v251_v1 = vmax.f32 %v166_v56, 0.0  ;;  %v245_v2 = vadd.f32 %v244_v0, %v81_v38  ;;  %v280_v7 = vmul.f32 %v272_v59, %v250_v55 }
 0x10e   :  { %v252_v3 = vmax.f32 %v168_v62, 0.0  ;;  %v253_v4 = vmax.f32 %v243_v63, 0.0  ;;  %v285_v5 = vadd.f32 %v278_v60, %v277_v54 }
 0x10f   :  { %v281_v6 = vmul.f32 %v260_v41, %v251_v1  ;;  %v254_v10 = vmax.f32 %v245_v2, 0.0 }
 0x110   :  { %v282_v8 = vmul.f32 %v264_v45, %v252_v3  ;;  %v283_v9 = vmul.f32 %v268_v47, %v253_v4  ;;  %v287_v11 = vadd.f32 %v285_v5, %v279_v61 }
 0x111   :  { %v284_v14 = vmul.f32 %v272_v59, %v254_v10 }
 0x112   :  { %v286_v12 = vadd.f32 %v282_v8, %v281_v6  ;;  %v289_v13 = vadd.f32 %v287_v11, %v280_v7 }
 0x114   :  { %291 = vadd.xlane.f32.xlu0 %v289_v13  ;;  %v288_v15 = vadd.f32 %v286_v12, %v283_v9 }
 0x116   :  { %v290_v16 = vadd.f32 %v288_v15, %v284_v14 }
 0x118   :  { %293 = vadd.xlane.f32.xlu0 %v290_v16 }
 0x1a1   :  { %v292_v17 = vpop.xlane.xlu0 %291 }
 0x1a2   :  { %v295_v18 = vrot.slane %v292_v17, 4 }
 0x1a4   :  { %v296_v19 = vmax.f32 %v292_v17, %v295_v18 }
 0x1a5   :  { %v294_v20 = vpop.xlane.xlu0 %293 }
 0x1a6   :  { %v297_v21 = vrot.slane %v296_v19, 2  ;;  %v301_v22 = vrot.slane %v294_v20, 4 }
 0x1a8   :  { %v298_v23 = vmax.f32 %v296_v19, %v297_v21  ;;  %v302_v24 = vmax.f32 %v294_v20, %v301_v22 }
 0x1aa   :  { %v299_v27 = vrot.slane %v298_v23, 1  ;;  %v303_v28 = vrot.slane %v302_v24, 2 }
 0x1ac   :  { %v300_v29 = vmax.f32 %v298_v23, %v299_v27  ;;  %v304_v30 = vmax.f32 %v302_v24, %v303_v28 }
 0x1ae   :  { %v307_v31 = vsub.f32 %v292_v17, %v300_v29  ;;  %v305_v32 = vrot.slane %v304_v30, 1 }
 0x1b0   :  { %v309_v33 = vmul.f32 1.442695, %v307_v31  ;;  %v306_v34 = vmax.f32 %v304_v30, %v305_v32 }
 0x1b2   :  { %402 = vpow2.f32 %v309_v33  ;;  %v308_v35 = vsub.f32 %v294_v20, %v306_v34 }
 0x1b4   :  { %v311_v36 = vmul.f32 1.442695, %v308_v35 }
 0x1b6   :  { %404 = vpow2.f32 %v311_v36 }
 0x1bc   :  { %v403_v37 = vpop.eup %402 }
 0x1bd   :  { %v313_v38 = vrot.slane %v403_v37, 4 }
 0x1bf   :  { %v314_v39 = vadd.f32 %v403_v37, %v313_v38 }
 0x1c0   :  { %v405_v40 = vpop.eup %404 }
 0x1c1   :  { %v319_v41 = vrot.slane %v405_v40, 4  ;;  %v315_v42 = vrot.slane %v314_v39, 2 }
 0x1c3   :  { %v320_v43 = vadd.f32 %v405_v40, %v319_v41  ;;  %v316_v44 = vadd.f32 %v315_v42, %v314_v39 }
 0x1c5   :  { %v317_v45 = vrot.slane %v316_v44, 1  ;;  %v321_v46 = vrot.slane %v320_v43, 2 }
 0x1c7   :  { %v318_v47 = vadd.f32 %v317_v45, %v316_v44  ;;  %v322_v48 = vadd.f32 %v321_v46, %v320_v43 }
 0x1c9   :  { %v323_v49 = vrot.slane %v322_v48, 1  ;;  %406 = vrcp.f32 %v318_v47 }
 0x1cb   :  { %v324_v50 = vadd.f32 %v323_v49, %v322_v48 }
 0x1cd   :  { %408 = vrcp.f32 %v324_v50 }
 0x1d3   :  { %v407_v51 = vpop.eup %406 }
 0x1d4   :  { %v327_v52 = vmul.f32 %v407_v51, %v318_v47 }
 0x1d6   :  { %v329_v53 = vsub.f32 2.0, %v327_v52 }
 0x1d7   :  { %v409_v54 = vpop.eup %408 }
 0x1d8   :  { %v328_v55 = vmul.f32 %v409_v54, %v324_v50  ;;  %v331_v56 = vmul.f32 %v407_v51, %v329_v53 }
 0x1da   :  { %v330_v57 = vsub.f32 2.0, %v328_v55  ;;  %v333_v58 = vmul.f32 %v403_v37, %v331_v56 }
 0x1dc   :  { %v332_v59 = vmul.f32 %v409_v54, %v330_v57  ;;  %v335_v60 = vmul.f32 %v333_v58, %v539_v25 }
 0x1de   :  { %v334_v61 = vmul.f32 %v405_v40, %v332_v59  ;;  %v337_v62 = vsel %vm86_vm0, %v335_v60, 0.0 }
 0x1df   :  { %v338_v63 = vrot.slane %v337_v62, 4 }
 0x1e0   :  { %v336_v0 = vmul.f32 %v334_v61, %v545_v26 }
 0x1e1   :  { %v339_v1 = vadd.f32 %v338_v63, %v337_v62 }
 0x1e2   :  { %v344_v2 = vsel %vm86_vm0, %v336_v0, 0.0 }
 0x1e3   :  { %v340_v3 = vrot.slane %v339_v1, 2  ;;  %v345_v4 = vrot.slane %v344_v2, 4 }
 0x1e5   :  { %v341_v5 = vadd.f32 %v340_v3, %v339_v1  ;;  %v346_v6 = vadd.f32 %v345_v4, %v344_v2 }
 0x1e7   :  { %v347_v7 = vrot.slane %v346_v6, 2  ;;  %v342_v8 = vrot.slane %v341_v5, 1 }
 0x1e9   :  { %v348_v9 = vadd.f32 %v347_v7, %v346_v6  ;;  %v343_v25 = vadd.f32 %v342_v8, %v341_v5 }
 0x1eb   :  { %v349_v10 = vrot.slane %v348_v9, 1 }
 0x1ed   :  { %v350_v11 = vadd.f32 %v349_v10, %v348_v9 }
 0x1ef   :  { %v354_v12 = vsel %vm353_vm1, %v350_v11, %v343_v25 }
 0x1f0   :  { %357 = vst.msk [vmem:[#allocation7] sm:$0x3] %vm356_vm2, %v354_v12 }
 0x1f1   :  { %465 = shalt.err (!%p462_p6)
}
 0x1f2   :  { %s466_s22 = scalar_lea.hbm %s577_s4, 32 }
 0x1f3   :  { %p467_p7 = scmp.ne.s32.totalorder %s577_s4, %s466_s22  ;;  %p470_p8 = scmp.lt.u32.totalorder %s466_s22, %s577_s4 }
 0x1f5   :  { %p472_p9 = pnand %p470_p8, %p467_p7 }
 0x1f7   :  { %475 = shalt.err (!%p472_p9)
}
 0x1f8   :  { %367 = dma.vmem_to_hbm [thread:$0]  %s365_s3, 32, %s577_s4, [#allocation4]  }
 0x1f9   :  { %480 = dma.done.wait [#allocation4], 32  }
 0x1fa   :  { %481 = vsyncadd [#allocation4], 4294967264 }
 0x1fb   :  { %371 = vsyncpa [#allocation3], 1 }
 0x1fc   :  { %372 = vsyncpa [#allocation6], 1 }
 0x1fd   :  { %373 = vsyncpa [#allocation4], 1 }

</bundles_post_ra>
